<compile_context>
chip_gen: v5e
topology: v5e:2x2
jax: 0.10.0
libtpu: 0.0.40
codegen_flags: <defaults>
</compile_context>

<pallas_src>
import jax
import jax.numpy as jnp
import numpy as np
from jax.experimental import pallas as pl
from jax.experimental.pallas import tpu as pltpu  # noqa: F401  (TPU backend)


# ---------------------------------------------------------------------------
# Config (mirrors cfg.SelfAtten.* / cfg.dim_embed of the PyTorch module)
# ---------------------------------------------------------------------------
NUM_HEADS = 4
DIM_K = 8          # dim_k == dim_q
DIM_V = 8
DIM_MODEL = 32     # dim_embed
SEQ_LEN = 8
BATCH = 2

_SCALE = np.float32(1.0 / np.sqrt(DIM_K))


def mha_kernel(x_ref, w_ref, wo_ref, o_ref):
    """Fused multi-head attention, whole batch + all heads in one invocation.

    x_ref  : (3, N, Dm)      stacked [Q, K, V] inputs, N = B*S
    w_ref  : (3, H, Dm, dk)  head-major, pre-transposed projection weights
    wo_ref : (H, dv, Dm)     head-major, pre-transposed output-projection weights
    o_ref  : (B, S, Dm)
    """
    H, B, S, Dm = NUM_HEADS, BATCH, SEQ_LEN, DIM_MODEL
    dk, dv = DIM_K, DIM_V
    N = B * S
    G = H * B

    x = x_ref[...]                                                     # (3, N, Dm)
    w = w_ref[...]                                                     # (3, H, Dm, dk)

    # Replicate inputs over heads along a leading (untiled) axis only.
    xb = jnp.broadcast_to(x[:, None], (3, H, N, Dm)).reshape(3 * H, N, Dm)
    wb = w.reshape(3 * H, Dm, dk)

    # All Q/K/V projections: one 3-D batched matmul (12 groups of (N,Dm)x(Dm,dk)).
    proj = jnp.einsum("gnd,gdk->gnk", xb, wb,
                      preferred_element_type=jnp.float32)              # (3H, N, dk)
    # Contiguous leading reshape: (3H, B*S, dk) -> (3, H*B, S, dk); group g = h*B + b.
    proj = proj.reshape(3, G, S, dk)
    q, k, v = proj[0], proj[1], proj[2]                                # (G, S, dk)

    # Scaled dot-product attention, batched over (head, batch) groups.
    scores = jnp.einsum("gqd,gkd->gqk", q, k,
                        preferred_element_type=jnp.float32) * _SCALE   # (G, S, S)
    # TODO(synk): optional `mask` / `temperature` args of the PyTorch forward are
    # not implemented (defaults used: mask=None, temperature=1.0).
    m = jnp.max(scores, axis=-1, keepdims=True)
    p = jnp.exp(scores - m)
    denom = jnp.sum(p, axis=-1, keepdims=True)
    attn = p * pl.reciprocal(denom, approx=False)                      # (G, S, S)

    ctx = jnp.einsum("gqk,gkd->gqd", attn, v,
                     preferred_element_type=jnp.float32)               # (G, S, dv)

    # Output projection per head (contiguous reshape to (H, B*S, dv)), then reduce
    # over heads with a leading-axis sum (plain VPU adds, no lane concat).
    ctx_h = ctx.reshape(H, N, dv)
    out_h = jnp.einsum("hnv,hvd->hnd", ctx_h, wo_ref[...],
                       preferred_element_type=jnp.float32)             # (H, N, Dm)
    out = jnp.sum(out_h, axis=0).reshape(B, S, Dm)                     # (B, S, Dm)
    o_ref[...] = out.astype(o_ref.dtype)


def multi_head_attention(q, k, v, wq, wk, wv, wo):
    """q,k,v: (B,S,Dm).  Weights in nn.Linear layout (out_features, in_features)."""
    B, S, Dm = q.shape
    H, dk, dv = NUM_HEADS, DIM_K, DIM_V
    assert dk == dv, "fused QKV layout assumes dim_k == dim_v"
    N = B * S

    # Head-major, pre-transposed projection weights: (H, Dm, d) per linear.
    def prep_w(w, d):
        return w.reshape(H, d, Dm).transpose(0, 2, 1)                  # (H, Dm, d)

    w_qkv = jnp.stack([prep_w(wq, dk), prep_w(wk, dk), prep_w(wv, dv)],
                      axis=0)                                          # (3, H, Dm, dk)

    # Stacked inputs (no per-head broadcast on the host; done in-kernel on a
    # leading axis to keep HBM->VMEM traffic minimal).
    x_qkv = jnp.stack([q.reshape(N, Dm), k.reshape(N, Dm), v.reshape(N, Dm)],
                      axis=0)                                          # (3, N, Dm)

    # Output-projection weights, head-major & pre-transposed: (H, dv, Dm).
    wo_hm = wo.T.reshape(H, dv, Dm)

    # Single invocation, no grid: all operands fit trivially in VMEM (~60 KB).
    return pl.pallas_call(
        mha_kernel,
        out_shape=jax.ShapeDtypeStruct((B, S, Dm), q.dtype),
    )(x_qkv, w_qkv, wo_hm)


def mha_reference(q, k, v, wq, wk, wv, wo):
    """Pure-JAX reference matching the PyTorch forward (full f32 precision)."""
    with jax.default_matmul_precision("highest"):
        B, S, Dm = q.shape
        qp = (q @ wq.T).reshape(B, S, NUM_HEADS, DIM_K).transpose(0, 2, 1, 3)
        kp = (k @ wk.T).reshape(B, S, NUM_HEADS, DIM_K).transpose(0, 2, 1, 3)
        vp = (v @ wv.T).reshape(B, S, NUM_HEADS, DIM_V).transpose(0, 2, 1, 3)
        scores = jnp.einsum("bhqd,bhkd->bhqk", qp, kp) / np.sqrt(DIM_K)
        attn = jax.nn.softmax(scores, axis=-1)
        out = jnp.einsum("bhqk,bhkd->bhqd", attn, vp)
        out = out.transpose(0, 2, 1, 3).reshape(B, S, NUM_HEADS * DIM_V)
        return out @ wo.T


if __name__ == "__main__":
    key = jax.random.PRNGKey(0)
    kq, kk, kv, kwq, kwk, kwv, kwo = jax.random.split(key, 7)

    Q = jax.random.normal(kq, (BATCH, SEQ_LEN, DIM_MODEL), dtype=jnp.float32)
    K = jax.random.normal(kk, (BATCH, SEQ_LEN, DIM_MODEL), dtype=jnp.float32)
    V = jax.random.normal(kv, (BATCH, SEQ_LEN, DIM_MODEL), dtype=jnp.float32)

    # nn.Linear-style weight shapes: (out_features, in_features), bias=False.
    Wq = jax.random.normal(kwq, (NUM_HEADS * DIM_K, DIM_MODEL), dtype=jnp.float32) * 0.1
    Wk = jax.random.normal(kwk, (NUM_HEADS * DIM_K, DIM_MODEL), dtype=jnp.float32) * 0.1
    Wv = jax.random.normal(kwv, (NUM_HEADS * DIM_V, DIM_MODEL), dtype=jnp.float32) * 0.1
    Wo = jax.random.normal(kwo, (DIM_MODEL, NUM_HEADS * DIM_V), dtype=jnp.float32) * 0.1

    out = multi_head_attention(Q, K, V, Wq, Wk, Wv, Wo)
    out = jax.block_until_ready(out)

    ref = mha_reference(Q, K, V, Wq, Wk, Wv, Wo)
    assert out.shape == (BATCH, SEQ_LEN, DIM_MODEL)
    assert jnp.allclose(out, ref, atol=1e-3, rtol=1e-3), \
        f"max abs err = {jnp.max(jnp.abs(out - ref))}"

    print("KERNEL_OK")
</pallas_src>

<mosaic_0001>
module attributes {stable_mosaic.version = 11 : i64} {
  func.func @mha_kernel(%arg0: memref<3x16x32xf32, #tpu.memory_space<vmem>>, %arg1: memref<3x4x32x8xf32, #tpu.memory_space<vmem>>, %arg2: memref<4x8x32xf32, #tpu.memory_space<vmem>>, %arg3: memref<2x8x32xf32, #tpu.memory_space<vmem>>) attributes {dimension_semantics = [], scalar_prefetch = 0 : i64, scratch_operands = 0 : i64, tpu.core_type = #tpu.core_type<tc>} {
    %c0 = arith.constant 0 : index
    %c0_0 = arith.constant 0 : index
    %c0_1 = arith.constant 0 : index
    %0 = vector.load %arg0[%c0, %c0_0, %c0_1] : memref<3x16x32xf32, #tpu.memory_space<vmem>>, vector<3x16x32xf32>
    %c0_2 = arith.constant 0 : index
    %c0_3 = arith.constant 0 : index
    %c0_4 = arith.constant 0 : index
    %c0_5 = arith.constant 0 : index
    %1 = vector.load %arg1[%c0_2, %c0_3, %c0_4, %c0_5] : memref<3x4x32x8xf32, #tpu.memory_space<vmem>>, vector<3x4x32x8xf32>
    %2 = vector.shape_cast %0 : vector<3x16x32xf32> to vector<3x1x16x32xf32>
    %3 = vector.shape_cast %2 : vector<3x1x16x32xf32> to vector<3x1x16x32xf32>
    %4 = vector.broadcast %3 : vector<3x1x16x32xf32> to vector<3x4x16x32xf32>
    %5 = vector.shape_cast %4 : vector<3x4x16x32xf32> to vector<12x16x32xf32>
    %6 = vector.shape_cast %1 : vector<3x4x32x8xf32> to vector<12x32x8xf32>
    "tpu.trace_start"() <{level = 10 : i32, message = "gnd,gdk->gnk"}> : () -> ()
    %cst = arith.constant dense<0.000000e+00> : vector<12x16x8xf32>
    %7 = tpu.matmul %5, %6, %cst {dimension_numbers = #tpu.dot_dimension_numbers<[2], [1], [1], [2], [0, 0, 0, 1, 1, 2], [0], [0]>} : vector<12x16x32xf32>, vector<12x32x8xf32>, vector<12x16x8xf32> -> vector<12x16x8xf32>
    "tpu.trace_stop"() : () -> ()
    %8 = vector.shape_cast %7 : vector<12x16x8xf32> to vector<3x8x8x8xf32>
    %9 = vector.extract_strided_slice %8 {offsets = [0, 0, 0, 0], sizes = [1, 8, 8, 8], strides = [1, 1, 1, 1]} : vector<3x8x8x8xf32> to vector<1x8x8x8xf32>
    %10 = vector.shape_cast %9 : vector<1x8x8x8xf32> to vector<8x8x8xf32>
    %11 = vector.extract_strided_slice %8 {offsets = [1, 0, 0, 0], sizes = [1, 8, 8, 8], strides = [1, 1, 1, 1]} : vector<3x8x8x8xf32> to vector<1x8x8x8xf32>
    %12 = vector.shape_cast %11 : vector<1x8x8x8xf32> to vector<8x8x8xf32>
    %13 = vector.extract_strided_slice %8 {offsets = [2, 0, 0, 0], sizes = [1, 8, 8, 8], strides = [1, 1, 1, 1]} : vector<3x8x8x8xf32> to vector<1x8x8x8xf32>
    %14 = vector.shape_cast %13 : vector<1x8x8x8xf32> to vector<8x8x8xf32>
    "tpu.trace_start"() <{level = 10 : i32, message = "gqd,gkd->gqk"}> : () -> ()
    %cst_6 = arith.constant dense<0.000000e+00> : vector<8x8x8xf32>
    %15 = tpu.matmul %10, %12, %cst_6 {dimension_numbers = #tpu.dot_dimension_numbers<[2], [2], [1], [1], [0, 0, 0, 1, 1, 1], [0], [0]>} : vector<8x8x8xf32>, vector<8x8x8xf32>, vector<8x8x8xf32> -> vector<8x8x8xf32>
    "tpu.trace_stop"() : () -> ()
    %cst_7 = arith.constant 0.353553385 : f32
    %16 = vector.broadcast %cst_7 : f32 to vector<8x8x8xf32>
    %17 = arith.mulf %15, %16 : vector<8x8x8xf32>
    %cst_8 = arith.constant dense<0xFF800000> : vector<8x8xf32>
    %18 = vector.multi_reduction <maximumf>, %17, %cst_8 [2] : vector<8x8x8xf32> to vector<8x8xf32>
    %19 = vector.shape_cast %18 : vector<8x8xf32> to vector<8x8x1xf32>
    %20 = vector.broadcast %19 : vector<8x8x1xf32> to vector<8x8x8xf32>
    %21 = arith.subf %17, %20 : vector<8x8x8xf32>
    %22 = math.exp %21 : vector<8x8x8xf32>
    %cst_9 = arith.constant dense<0.000000e+00> : vector<8x8xf32>
    %23 = vector.multi_reduction <add>, %22, %cst_9 [2] : vector<8x8x8xf32> to vector<8x8xf32>
    %24 = vector.shape_cast %23 : vector<8x8xf32> to vector<8x8x1xf32>
    %25 = tpu.reciprocal %24 : vector<8x8x1xf32> -> vector<8x8x1xf32>
    %26 = vector.broadcast %25 : vector<8x8x1xf32> to vector<8x8x8xf32>
    %27 = arith.mulf %22, %26 : vector<8x8x8xf32>
    "tpu.trace_start"() <{level = 10 : i32, message = "gqk,gkd->gqd"}> : () -> ()
    %cst_10 = arith.constant dense<0.000000e+00> : vector<8x8x8xf32>
    %28 = tpu.matmul %27, %14, %cst_10 {dimension_numbers = #tpu.dot_dimension_numbers<[2], [1], [1], [2], [0, 0, 0, 1, 1, 2], [0], [0]>} : vector<8x8x8xf32>, vector<8x8x8xf32>, vector<8x8x8xf32> -> vector<8x8x8xf32>
    "tpu.trace_stop"() : () -> ()
    %29 = vector.shape_cast %28 : vector<8x8x8xf32> to vector<4x16x8xf32>
    %c0_11 = arith.constant 0 : index
    %c0_12 = arith.constant 0 : index
    %c0_13 = arith.constant 0 : index
    %30 = vector.load %arg2[%c0_11, %c0_12, %c0_13] : memref<4x8x32xf32, #tpu.memory_space<vmem>>, vector<4x8x32xf32>
    "tpu.trace_start"() <{level = 10 : i32, message = "hnv,hvd->hnd"}> : () -> ()
    %cst_14 = arith.constant dense<0.000000e+00> : vector<4x16x32xf32>
    %31 = tpu.matmul %29, %30, %cst_14 {dimension_numbers = #tpu.dot_dimension_numbers<[2], [1], [1], [2], [0, 0, 0, 1, 1, 2], [0], [0]>} : vector<4x16x8xf32>, vector<4x8x32xf32>, vector<4x16x32xf32> -> vector<4x16x32xf32>
    "tpu.trace_stop"() : () -> ()
    %cst_15 = arith.constant dense<0.000000e+00> : vector<16x32xf32>
    %32 = vector.multi_reduction <add>, %31, %cst_15 [0] : vector<4x16x32xf32> to vector<16x32xf32>
    %33 = vector.shape_cast %32 : vector<16x32xf32> to vector<2x8x32xf32>
    %c0_16 = arith.constant 0 : index
    %c0_17 = arith.constant 0 : index
    %c0_18 = arith.constant 0 : index
    %34 = vector.load %arg3[%c0_16, %c0_17, %c0_18] : memref<2x8x32xf32, #tpu.memory_space<vmem>>, vector<2x8x32xf32>
    tpu.vector_store %arg3[%c0_16, %c0_17, %c0_18], %33 {strides = array<i32>} : memref<2x8x32xf32, #tpu.memory_space<vmem>>, vector<2x8x32xf32>,
    return
  }
}

</mosaic_0001>

<bundles_post_ra>
// kernel: tpu_custom_call.1
= control target key start
LH: loop header
LB: loop body
LE: loop exit
PB: predicated region body
PF: predicated region fallthrough
CT: control target
= control target key end

     0   :  { %vm69_vm0 = vcmask 261120   ;;  %s1626_s0 = inlined_call_operand.vmem [shape: f32[3,16,32], index: 0, kind: input, shape index: {}]   ;;  %s1627_s1 = inlined_call_operand.vmem [shape: f32[3,4,32,8], index: 1, kind: input, shape index: {}]   ;;  %s1628_s2 = inlined_call_operand.vmem [shape: f32[4,8,32], index: 2, kind: input, shape index: {}]   ;;  %s1629_s3 = inlined_call_operand.hbm [shape: f32[2,8,32], index: 3, kind: output, shape index: {}]  }
   0x1   :  { %v24_v0 = vld [vmem:[%s1627_s1 + $0x18] sm:$0xff]  ;;  %v23_v2 = vld [vmem:[%s1627_s1 + $0x10] sm:$0xff]  ;;  %v22_v5 = vld [vmem:[%s1627_s1 + $0x8] sm:$0xff] }
   0x2   :  { %v28_v1 = vld [vmem:[%s1627_s1 + $0x38] sm:$0xff]  ;;  %88 = vmatpush.msra.mxu0 %v24_v0  ;;  %v27_v3 = vld [vmem:[%s1627_s1 + $0x30] sm:$0xff]  ;;  %v26_v6 = vld [vmem:[%s1627_s1 + $0x28] sm:$0xff] }
   0x3   :  { %111 = vmatpush.msra.mxu1 %v28_v1  ;;  %v36_v4 = vld [vmem:[%s1627_s1 + $0x78] sm:$0xff]  ;;  %v35_v7 = vld [vmem:[%s1627_s1 + $0x70] sm:$0xff]  ;;  %v34_v8 = vld [vmem:[%s1627_s1 + $0x68] sm:$0xff] }
   0x4   :  { %157 = vmatpush.msra.mxu3 %v36_v4  ;;  %89 = vmatpush.msra.mxu0 %v23_v2  ;;  %v21_v9 = vld [vmem:[%s1627_s1] sm:$0xff]  ;;  %v32_v11 = vld [vmem:[%s1627_s1 + $0x58] sm:$0xff]  ;;  %v31_v14 = vld [vmem:[%s1627_s1 + $0x50] sm:$0xff] }
   0x5   :  { %112 = vmatpush.msra.mxu1 %v27_v3  ;;  %v25_v10 = vld [vmem:[%s1627_s1 + $0x20] sm:$0xff]  ;;  %134 = vmatpush.msra.mxu2 %v32_v11  ;;  %v40_v15 = vld [vmem:[%s1627_s1 + $0x98] sm:$0xff]  ;;  %v30_v16 = vld [vmem:[%s1627_s1 + $0x48] sm:$0xff] }
   0x6   :  { %158 = vmatpush.msra.mxu3 %v35_v7  ;;  %90 = vmatpush.msra.mxu0 %v22_v5  ;;  %v15_v12 = vld [vmem:[%s1626_s0] sm:$0xff]  ;;  %v44_v17 = vld [vmem:[%s1627_s1 + $0xb8] sm:$0xff]  ;;  %v39_v18 = vld [vmem:[%s1627_s1 + $0x90] sm:$0xff] }
   0x7   :  { %113 = vmatpush.msra.mxu1 %v26_v6  ;;  %v33_v13 = vld [vmem:[%s1627_s1 + $0x60] sm:$0xff]  ;;  %135 = vmatpush.msra.mxu2 %v31_v14  ;;  %v52_v19 = vld [vmem:[%s1627_s1 + $0xf8] sm:$0xff]  ;;  %v43_v21 = vld [vmem:[%s1627_s1 + $0xb0] sm:$0xff] }
   0x8   :  { %159 = vmatpush.msra.mxu3 %v34_v8  ;;  %91 = vmatpush.msra.mxu0 %v21_v9  ;;  %v29_v20 = vld [vmem:[%s1627_s1 + $0x40] sm:$0xff]  ;;  %v38_v22 = vld [vmem:[%s1627_s1 + $0x88] sm:$0xff]  ;;  %v51_v24 = vld [vmem:[%s1627_s1 + $0xf0] sm:$0xff] }
   0x9   :  { %114 = vmatpush.msra.mxu1 %v25_v10  ;;  %1111 = vmatmul.msk.f32.vlgmr.msra.gmra.mxu0 %vm69_vm0, %v15_v12  ;;  %v42_v23 = vld [vmem:[%s1627_s1 + $0xa8] sm:$0xff] }
   0xa   :  { %1113 = vmatmul.msk.f32.vlgmr.msra.gmra.mxu1 %vm69_vm0, %v15_v12  ;;  %160 = vmatpush.msra.mxu3 %v33_v13  ;;  %v16_v25 = vld [vmem:[%s1626_s0 + $0x8] sm:$0xff] }
   0xb   :  { %1117 = vmatmul.msk.f32.vlgmr.msra.gmra.mxu3 %vm69_vm0, %v15_v12  ;;  %186 = vmatpush.msrb.mxu0 %v40_v15 }
   0xc   :  { %136 = vmatpush.msra.mxu2 %v30_v16  ;;  %209 = vmatpush.msrb.mxu1 %v44_v17 }
   0xd   :  { %187 = vmatpush.msrb.mxu0 %v39_v18  ;;  %255 = vmatpush.msrb.mxu3 %v52_v19 }
   0xe   :  { %137 = vmatpush.msra.mxu2 %v29_v20  ;;  %210 = vmatpush.msrb.mxu1 %v43_v21 }
   0xf   :  { %8 = vsyncpa [#allocation3], 0  ;;  %1115 = vmatmul.msk.f32.vlgmr.msra.gmra.mxu2 %vm69_vm0, %v15_v12  ;;  %188 = vmatpush.msrb.mxu0 %v38_v22  ;;  %v37_v26 = vld [vmem:[%s1627_s1 + $0x80] sm:$0xff]  ;;  %v48_v28 = vld [vmem:[%s1627_s1 + $0xd8] sm:$0xff]  ;;  %vm364_vm1 = vcmask 64512   ;;  %s1099_s21 = sshll.u32 %s1629_s3, 4  ;;  %s1100_s21 = int_to_ptr.hbm [resolvable:$true] %s1099_s21 }
  0x10   :  { %v41_v27 = vld [vmem:[%s1627_s1 + $0xa0] sm:$0xff]  ;;  %211 = vmatpush.msrb.mxu1 %v42_v23  ;;  %256 = vmatpush.msrb.mxu3 %v51_v24  ;;  %v50_v29 = vld [vmem:[%s1627_s1 + $0xe8] sm:$0xff]  ;;  %v56_v30 = vld [vmem:[%s1627_s1 + $0x118] sm:$0xff]  ;;  %s1229_s22 = smov 128   ;;  %s1230_s23 = smov 8  }
  0x11   :  { %1112 = vmatmul.msk.f32.gmra.mxu0 %vm69_vm0, %v16_v25  ;;  %v47_v31 = vld [vmem:[%s1627_s1 + $0xd0] sm:$0xff]  ;;  %v49_v32 = vld [vmem:[%s1627_s1 + $0xe0] sm:$0xff]  ;;  %232 = vmatpush.msrb.mxu2 %v48_v28  ;;  %v46_v34 = vld [vmem:[%s1627_s1 + $0xc8] sm:$0xff] }
  0x12   :  { %1114 = vmatmul.msk.f32.gmra.mxu1 %vm69_vm0, %v16_v25  ;;  %189 = vmatpush.msrb.mxu0 %v37_v26  ;;  %v55_v33 = vld [vmem:[%s1627_s1 + $0x110] sm:$0xff]  ;;  %v45_v36 = vld [vmem:[%s1627_s1 + $0xc0] sm:$0xff]  ;;  %v64_v37 = vld [vmem:[%s1627_s1 + $0x158] sm:$0xff] }
  0x13   :  { %212 = vmatpush.msrb.mxu1 %v41_v27  ;;  %1118 = vmatmul.msk.f32.gmra.mxu3 %vm69_vm0, %v16_v25  ;;  %v17_v35 = vld [vmem:[%s1626_s0 + $0x10] sm:$0xff]  ;;  %v18_v39 = vld [vmem:[%s1626_s0 + $0x18] sm:$0xff]  ;;  %v54_v40 = vld [vmem:[%s1627_s1 + $0x108] sm:$0xff] }
  0x14   :  { %257 = vmatpush.msrb.mxu3 %v50_v29  ;;  %284 = vmatpush.msra.mxu0 %v56_v30  ;;  %v63_v38 = vld [vmem:[%s1627_s1 + $0x150] sm:$0xff]  ;;  %v62_v41 = vld [vmem:[%s1627_s1 + $0x148] sm:$0xff]  ;;  %v53_v42 = vld [vmem:[%s1627_s1 + $0x100] sm:$0xff] }
  0x15   :  { %233 = vmatpush.msrb.mxu2 %v47_v31  ;;  %v61_v43 = vld [vmem:[%s1627_s1 + $0x140] sm:$0xff]  ;;  %v60_v45 = vld [vmem:[%s1627_s1 + $0x138] sm:$0xff]  ;;  %v59_v47 = vld [vmem:[%s1627_s1 + $0x130] sm:$0xff] }
  0x16   :  { %258 = vmatpush.msrb.mxu3 %v49_v32  ;;  %285 = vmatpush.msra.mxu0 %v55_v33  ;;  %v19_v44 = vld [vmem:[%s1626_s0 + $0x20] sm:$0xff]  ;;  %v68_v46 = vld [vmem:[%s1627_s1 + $0x178] sm:$0xff]  ;;  %v67_v48 = vld [vmem:[%s1627_s1 + $0x170] sm:$0xff] }
  0x17   :  { %1116 = vmatmul.msk.f32.gmra.mxu2 %vm69_vm0, %v16_v25  ;;  %307 = vmatpush.msra.mxu1 %v60_v45  ;;  %v58_v49 = vld [vmem:[%s1627_s1 + $0x128] sm:$0xff]  ;;  %v57_v51 = vld [vmem:[%s1627_s1 + $0x120] sm:$0xff] }
  0x18   :  { %234 = vmatpush.msrb.mxu2 %v46_v34  ;;  %286 = vmatpush.msra.mxu0 %v54_v40  ;;  %v66_v50 = vld [vmem:[%s1627_s1 + $0x168] sm:$0xff]  ;;  %v65_v52 = vld [vmem:[%s1627_s1 + $0x160] sm:$0xff] }
  0x19   :  { %1119 = vmatmul.msk.f32.vlgmr.msrb.gmra.mxu0 %vm69_vm0, %v17_v35  ;;  %353 = vmatpush.msra.mxu3 %v68_v46  ;;  %v20_v53 = vld [vmem:[%s1626_s0 + $0x28] sm:$0xff] }
  0x1a   :  { %1121 = vmatmul.msk.f32.vlgmr.msrb.gmra.mxu1 %vm69_vm0, %v17_v35  ;;  %235 = vmatpush.msrb.mxu2 %v45_v36 }
  0x1b   :  { %1125 = vmatmul.msk.f32.vlgmr.msrb.gmra.mxu3 %vm69_vm0, %v17_v35  ;;  %287 = vmatpush.msra.mxu0 %v53_v42 }
  0x1c   :  { %330 = vmatpush.msra.mxu2 %v64_v37  ;;  %308 = vmatpush.msra.mxu1 %v59_v47 }
  0x1d   :  { %354 = vmatpush.msra.mxu3 %v67_v48 }
  0x1e   :  { %331 = vmatpush.msra.mxu2 %v63_v38  ;;  %309 = vmatpush.msra.mxu1 %v58_v49 }
  0x1f   :  { %1123 = vmatmul.msk.f32.vlgmr.msrb.gmra.mxu2 %vm69_vm0, %v17_v35  ;;  %355 = vmatpush.msra.mxu3 %v66_v50 }
  0x20   :  { %332 = vmatpush.msra.mxu2 %v62_v41  ;;  %310 = vmatpush.msra.mxu1 %v57_v51 }
  0x21   :  { %1120 = vmatmul.msk.f32.gmra.mxu0 %vm69_vm0, %v18_v39  ;;  %356 = vmatpush.msra.mxu3 %v65_v52 }
  0x22   :  { %1122 = vmatmul.msk.f32.gmra.mxu1 %vm69_vm0, %v18_v39  ;;  %333 = vmatpush.msra.mxu2 %v61_v43 }
  0x23   :  { %1126 = vmatmul.msk.f32.gmra.mxu3 %vm69_vm0, %v18_v39 }
  0x27   :  { %1124 = vmatmul.msk.f32.gmra.mxu2 %vm69_vm0, %v18_v39 }
  0x29   :  { %1127 = vmatmul.msk.f32.vlgmr.msra.gmra.mxu0 %vm69_vm0, %v19_v44 }
  0x2a   :  { %1129 = vmatmul.msk.f32.vlgmr.msra.gmra.mxu1 %vm69_vm0, %v19_v44 }
  0x2b   :  { %1133 = vmatmul.msk.f32.vlgmr.msra.gmra.mxu3 %vm69_vm0, %v19_v44 }
  0x2f   :  { %1131 = vmatmul.msk.f32.vlgmr.msra.gmra.mxu2 %vm69_vm0, %v19_v44 }
  0x31   :  { %1128 = vmatmul.msk.f32.gmra.mxu0 %vm69_vm0, %v20_v53 }
  0x32   :  { %1130 = vmatmul.msk.f32.gmra.mxu1 %vm69_vm0, %v20_v53 }
  0x33   :  { %1134 = vmatmul.msk.f32.gmra.mxu3 %vm69_vm0, %v20_v53 }
  0x37   :  { %1132 = vmatmul.msk.f32.gmra.mxu2 %vm69_vm0, %v20_v53 }
  0x86   :  { %v93_v54 = vpop.f32.mrf.mxu0 }
  0x87   :  { %v116_v55 = vpop.f32.mrf.mxu1 }
  0x8e   :  { %v96_v56 = vpop.f32.mrf.mxu0  ;;  %v162_v58 = vpop.f32.mrf.mxu3 }
  0x8f   :  { %v119_v57 = vpop.f32.mrf.mxu1 }
  0x92   :  { %v139_v59 = vpop.f32.mrf.mxu2 }
  0x96   :  { %v191_v60 = vpop.f32.mrf.mxu0  ;;  %v165_v62 = vpop.f32.mrf.mxu3 }
  0x97   :  { %v214_v61 = vpop.f32.mrf.mxu1  ;;  %1135 = vmatpush.xpose.msk.msrb.mxu0 %vm364_vm1, %v191_v60 }
  0x98   :  { %1139 = vmatpush.xpose.msk.msrb.mxu2 %vm364_vm1, %v214_v61 }
  0x9a   :  { %1136 = vmatmul.msk.f32.vlgmr.msrb.gmra.mxu0 %vm364_vm1, %v93_v54  ;;  %v142_v63 = vpop.f32.mrf.mxu2 }
  0x9b   :  { %1140 = vmatmul.msk.f32.vlgmr.msrb.gmra.mxu2 %vm364_vm1, %v116_v55 }
  0x9e   :  { %v194_v0 = vpop.f32.mrf.mxu0  ;;  %v260_v2 = vpop.f32.mrf.mxu3 }
  0x9f   :  { %v217_v1 = vpop.f32.mrf.mxu1  ;;  %1137 = vmatpush.xpose.msk.msrb.mxu1 %vm364_vm1, %v194_v0  ;;  %1147 = vmatpush.xpose.msk.msra.mxu2 %vm364_vm1, %v260_v2 }
  0xa0   :  { %1141 = vmatpush.xpose.msk.msrb.mxu3 %vm364_vm1, %v217_v1 }
  0xa2   :  { %1138 = vmatmul.msk.f32.vlgmr.msrb.gmra.mxu1 %vm364_vm1, %v96_v56  ;;  %v237_v3 = vpop.f32.mrf.mxu2 }
  0xa3   :  { %1142 = vmatmul.msk.f32.vlgmr.msrb.gmra.mxu3 %vm364_vm1, %v119_v57  ;;  %1148 = vmatmul.msk.f32.vlgmr.msra.gmra.mxu2 %vm364_vm1, %v162_v58 }
  0xa4   :  { %1143 = vmatpush.xpose.msk.msra.mxu0 %vm364_vm1, %v237_v3 }
  0xa6   :  { %v263_v4 = vpop.f32.mrf.mxu3  ;;  %v289_v6 = vpop.f32.mrf.mxu0 }
  0xa7   :  { %1144 = vmatmul.msk.f32.vlgmr.msra.gmra.mxu0 %vm364_vm1, %v139_v59  ;;  %1149 = vmatpush.xpose.msk.msra.mxu3 %vm364_vm1, %v263_v4  ;;  %v312_v9 = vpop.f32.mrf.mxu1 }
  0xa8   :  { %791 = vmatpush.msrb.mxu0 %v289_v6  ;;  %837 = vmatpush.msrb.mxu2 %v312_v9 }
  0xaa   :  { %v240_v5 = vpop.f32.mrf.mxu2 }
  0xab   :  { %1150 = vmatmul.msk.f32.vlgmr.msra.gmra.mxu3 %vm364_vm1, %v165_v62  ;;  %1145 = vmatpush.xpose.msk.msra.mxu1 %vm364_vm1, %v240_v5 }
  0xae   :  { %1146 = vmatmul.msk.f32.vlgmr.msra.gmra.mxu1 %vm364_vm1, %v142_v63  ;;  %v292_v8 = vpop.f32.mrf.mxu0  ;;  %v358_v11 = vpop.f32.mrf.mxu3 }
  0xaf   :  { %814 = vmatpush.msrb.mxu1 %v292_v8  ;;  %v315_v12 = vpop.f32.mrf.mxu1  ;;  %929 = vmatpush.msra.mxu2 %v358_v11 }
  0xb0   :  { %860 = vmatpush.msrb.mxu3 %v315_v12 }
  0xb2   :  { %v335_v7 = vpop.f32.mrf.mxu2 }
  0xb3   :  { %883 = vmatpush.msra.mxu0 %v335_v7 }
  0xb6   :  { %v361_v13 = vpop.f32.mrf.mxu3 }
  0xb7   :  { %952 = vmatpush.msra.mxu3 %v361_v13 }
  0xba   :  { %v338_v10 = vpop.f32.mrf.mxu2 }
  0xbb   :  { %906 = vmatpush.msra.mxu1 %v338_v10 }
 0x117   :  { %v388_v14 = vpop.f32.mrf.mxu0 }
 0x118   :  { %v573_v22 = vmul.f32 0.35355338, %v388_v14 }
 0x11a   :  { %v581_v27 = vsel %vm364_vm1, %v573_v22, -inf }
 0x11e   :  { %v440_v15 = vpop.f32.mrf.mxu2 }
 0x11f   :  { %v575_v16 = vmul.f32 0.35355338, %v440_v15  ;;  %v414_v17 = vpop.f32.mrf.mxu1 }
 0x120   :  { %v574_v18 = vmul.f32 0.35355338, %v414_v17 }
 0x121   :  { %v587_v19 = vsel %vm364_vm1, %v575_v16, -inf }
 0x122   :  { %588 = vmax.xlane.f32.xlu0 %v587_v19  ;;  %v584_v20 = vsel %vm364_vm1, %v574_v18, -inf }
 0x123   :  { %585 = vmax.xlane.f32.xlu2 %v584_v20 }
 0x124   :  { %v492_v21 = vpop.f32.mrf.mxu0 }
 0x125   :  { %v577_v25 = vmul.f32 0.35355338, %v492_v21 }
 0x126   :  { %v466_v23 = vpop.f32.mrf.mxu3  ;;  %v544_v28 = vpop.f32.mrf.mxu2 }
 0x127   :  { %v576_v24 = vmul.f32 0.35355338, %v466_v23  ;;  %v593_v29 = vsel %vm364_vm1, %v577_v25, -inf  ;;  %v579_v30 = vmul.f32 0.35355338, %v544_v28 }
 0x129   :  { %v590_v26 = vsel %vm364_vm1, %v576_v24, -inf  ;;  %v599_v33 = vsel %vm364_vm1, %v579_v30, -inf }
 0x12a   :  { %591 = vmax.xlane.f32.xlu1 %v590_v26  ;;  %582 = vmax.xlane.f32.xlu0 %v581_v27 }
 0x12b   :  { %594 = vmax.xlane.f32.xlu2 %v593_v29  ;;  %v518_v34 = vpop.f32.mrf.mxu1 }
 0x12c   :  { %v578_v36 = vmul.f32 0.35355338, %v518_v34 }
 0x12e   :  { %v570_v31 = vpop.f32.mrf.mxu3  ;;  %v596_v37 = vsel %vm364_vm1, %v578_v36, -inf }
 0x12f   :  { %v580_v32 = vmul.f32 0.35355338, %v570_v31 }
 0x131   :  { %v602_v35 = vsel %vm364_vm1, %v580_v32, -inf }
 0x132   :  { %600 = vmax.xlane.f32.xlu1 %v599_v33  ;;  %603 = vmax.xlane.f32.xlu0 %v602_v35 }
 0x13a   :  { %597 = vmax.xlane.f32.xlu1 %v596_v37 }
 0x195   :  { %v589_v38 = vpop.xlane.xlu0 %588 }
 0x196   :  { %v607_v39 = vsub.f32 %v575_v16, %v589_v38  ;;  %v586_v40 = vpop.xlane.xlu2 %585 }
 0x197   :  { %v606_v51 = vsub.f32 %v574_v18, %v586_v40 }
 0x198   :  { %v617_v41 = vmul.f32 1.442695, %v607_v39 }
 0x199   :  { %v615_v54 = vmul.f32 1.442695, %v606_v51 }
 0x19a   :  { %1170 = vpow2.f32 %v617_v41 }
 0x19d   :  { %v592_v42 = vpop.xlane.xlu1 %591  ;;  %v583_v43 = vpop.xlane.xlu0 %582 }
 0x19e   :  { %v608_v44 = vsub.f32 %v576_v24, %v592_v42  ;;  %v605_v45 = vsub.f32 %v573_v22, %v583_v43  ;;  %v595_v46 = vpop.xlane.xlu2 %594 }
 0x19f   :  { %v609_v50 = vsub.f32 %v577_v25, %v595_v46 }
 0x1a0   :  { %v1461_v47 = vpop.eup %1170  ;;  %v619_v48 = vmul.f32 1.442695, %v608_v44  ;;  %v613_v49 = vmul.f32 1.442695, %v605_v45 }
 0x1a1   :  { %v635_v52 = vsel %vm364_vm1, %v1461_v47, 0.0  ;;  %v621_v53 = vmul.f32 1.442695, %v609_v50 }
 0x1a2   :  { %1172 = vpow2.f32 %v619_v48  ;;  %636 = vadd.xlane.f32.xlu2 %v635_v52 }
 0x1a3   :  { %1174 = vpow2.f32 %v613_v49 }
 0x1a4   :  { %1176 = vpow2.f32 %v621_v53 }
 0x1a5   :  { %v601_v55 = vpop.xlane.xlu1 %600  ;;  %v604_v57 = vpop.xlane.xlu0 %603  ;;  %1178 = vpow2.f32 %v615_v54 }
 0x1a6   :  { %v611_v56 = vsub.f32 %v579_v30, %v601_v55  ;;  %v612_v60 = vsub.f32 %v580_v32, %v604_v57 }
 0x1a8   :  { %v1465_v58 = vpop.eup %1172  ;;  %v625_v59 = vmul.f32 1.442695, %v611_v56  ;;  %v627_v0 = vmul.f32 1.442695, %v612_v60 }
 0x1a9   :  { %v1467_v61 = vpop.eup %1174  ;;  %v638_v62 = vsel %vm364_vm1, %v1465_v58, 0.0 }
 0x1aa   :  { %1180 = vpow2.f32 %v625_v59  ;;  %639 = vadd.xlane.f32.xlu1 %v638_v62  ;;  %v629_v63 = vsel %vm364_vm1, %v1467_v61, 0.0  ;;  %v1473_v2 = vpop.eup %1176 }
 0x1ab   :  { %630 = vadd.xlane.f32.xlu0 %v629_v63  ;;  %v1475_v4 = vpop.eup %1178  ;;  %1182 = vpow2.f32 %v627_v0  ;;  %v641_v8 = vsel %vm364_vm1, %v1473_v2, 0.0 }
 0x1ac   :  { %v632_v9 = vsel %vm364_vm1, %v1475_v4, 0.0 }
 0x1ad   :  { %v598_v1 = vpop.xlane.xlu1 %597 }
 0x1ae   :  { %v610_v3 = vsub.f32 %v578_v36, %v598_v1 }
 0x1b0   :  { %v1477_v5 = vpop.eup %1180  ;;  %v623_v6 = vmul.f32 1.442695, %v610_v3 }
 0x1b1   :  { %v647_v7 = vsel %vm364_vm1, %v1477_v5, 0.0  ;;  %v1485_v10 = vpop.eup %1182 }
 0x1b2   :  { %1184 = vpow2.f32 %v623_v6  ;;  %648 = vadd.xlane.f32.xlu2 %v647_v7  ;;  %642 = vadd.xlane.f32.xlu1 %v641_v8  ;;  %v650_v13 = vsel %vm364_vm1, %v1485_v10, 0.0 }
 0x1b3   :  { %633 = vadd.xlane.f32.xlu0 %v632_v9 }
 0x1b8   :  { %v1487_v11 = vpop.eup %1184 }
 0x1b9   :  { %v644_v12 = vsel %vm364_vm1, %v1487_v11, 0.0 }
 0x1ba   :  { %651 = vadd.xlane.f32.xlu2 %v650_v13 }
 0x1bb   :  { %645 = vadd.xlane.f32.xlu0 %v644_v12 }
 0x215   :  { %v637_v14 = vpop.xlane.xlu2 %636 }
 0x216   :  { %1186 = vrcp.f32 %v637_v14  ;;  %v692_v21 = vand.u32 2147483648, %v637_v14  ;;  %vm686_vm3 = vweird.f32 %v637_v14  ;;  %v690_v24 = vand.u32 2147483647, %v637_v14 }
 0x218   :  { %v693_v31 = vor.u32 1.1754944e-38, %v692_v21  ;;  %vm691_vm5 = vcmp.eq.f32.partialorder %v690_v24, 8.507059e+37 }
 0x21c   :  { %v1187_v15 = vpop.eup %1186 }
 0x21d   :  { %v682_v16 = vmul.f32 %v1187_v15, %v637_v14  ;;  %v640_v17 = vpop.xlane.xlu1 %639  ;;  %vm687_vm2 = vweird.f32 %v1187_v15 }
 0x21e   :  { %1188 = vrcp.f32 %v640_v17  ;;  %v631_v18 = vpop.xlane.xlu0 %630  ;;  %vm1495_vm4 = vmor %vm686_vm3, %vm687_vm2  ;;  %v704_v35 = vand.u32 2147483647, %v640_v17  ;;  %v706_v36 = vand.u32 2147483648, %v640_v17  ;;  %vm700_vm6 = vweird.f32 %v640_v17 }
 0x21f   :  { %v683_v19 = vsub.f32 1.0, %v682_v16  ;;  %1190 = vrcp.f32 %v631_v18  ;;  %v662_v38 = vand.u32 2147483647, %v631_v18  ;;  %v664_v41 = vand.u32 2147483648, %v631_v18 }
 0x220   :  { %vm658_vm7 = vweird.f32 %v631_v18  ;;  %vm1514_vm10 = vcmp.eq.f32.partialorder %v704_v35, 8.507059e+37  ;;  %v707_v45 = vor.u32 1.1754944e-38, %v706_v36 }
 0x221   :  { %v684_v20 = vmul.f32 %v1187_v15, %v683_v19  ;;  %vm1525_vm12 = vcmp.eq.f32.partialorder %v662_v38, 8.507059e+37  ;;  %v665_v55 = vor.u32 1.1754944e-38, %v664_v41 }
 0x223   :  { %v685_v22 = vadd.f32 %v1187_v15, %v684_v20 }
 0x224   :  { %v1493_v23 = vpop.eup %1188 }
 0x225   :  { %v1191_v25 = vpop.eup %1190  ;;  %v696_v27 = vmul.f32 %v1493_v23, %v640_v17  ;;  %v1500_v28 = vpop.xlane.xlu1 %642  ;;  %v689_v30 = vsel %vm1495_vm4, %v1187_v15, %v685_v22  ;;  %vm701_vm9 = vweird.f32 %v1493_v23 }
 0x226   :  { %v1502_v29 = vpop.xlane.xlu2 %648  ;;  %v654_v32 = vmul.f32 %v1191_v25, %v631_v18  ;;  %v1506_v33 = vpop.xlane.xlu0 %633  ;;  %1192 = vrcp.f32 %v1500_v28  ;;  %v694_v39 = vsel %vm691_vm5, %v693_v31, %v689_v30  ;;  %vm659_vm8 = vweird.f32 %v1191_v25  ;;  %vm1532_vm14 = vmor %vm700_vm6, %vm701_vm9 }
 0x227   :  { %v697_v34 = vsub.f32 1.0, %v696_v27  ;;  %1194 = vrcp.f32 %v1506_v33  ;;  %v676_v49 = vand.u32 2147483647, %v1506_v33  ;;  %v678_v50 = vand.u32 2147483648, %v1506_v33  ;;  %vm1521_vm11 = vmor %vm658_vm7, %vm659_vm8 }
 0x228   :  { %v655_v37 = vsub.f32 1.0, %v654_v32  ;;  %1196 = vrcp.f32 %v1502_v29  ;;  %v767_v51 = vmul.f32 %v1461_v47, %v694_v39  ;;  %vm672_vm13 = vweird.f32 %v1506_v33 }
 0x229   :  { %v698_v40 = vmul.f32 %v1493_v23, %v697_v34  ;;  %vm714_vm15 = vweird.f32 %v1500_v28  ;;  %v718_v60 = vand.u32 2147483647, %v1500_v28  ;;  %v720_v6 = vand.u32 2147483648, %v1500_v28 }
 0x22a   :  { %v656_v42 = vmul.f32 %v1191_v25, %v655_v37  ;;  %1153 = vmatmul.msk.f32.vlgmr.msrb.gmra.mxu2 %vm364_vm1, %v767_v51  ;;  %vm1551_vm2 = vcmp.eq.f32.partialorder %v676_v49, 8.507059e+37  ;;  %v679_v9 = vor.u32 1.1754944e-38, %v678_v50  ;;  %v746_v20 = vand.u32 2147483647, %v1502_v29 }
 0x22b   :  { %v699_v43 = vadd.f32 %v1493_v23, %v698_v40  ;;  %v721_v19 = vor.u32 1.1754944e-38, %v720_v6  ;;  %v748_v21 = vand.u32 2147483648, %v1502_v29  ;;  %vm719_vm8 = vcmp.eq.f32.partialorder %v718_v60, 8.507059e+37 }
 0x22c   :  { %v1193_v46 = vpop.eup %1192  ;;  %v657_v48 = vadd.f32 %v1191_v25, %v656_v42  ;;  %vm742_vm9 = vweird.f32 %v1502_v29 }
 0x22d   :  { %v1195_v52 = vpop.eup %1194  ;;  %v710_v56 = vmul.f32 %v1193_v46, %v1500_v28  ;;  %v703_v1 = vsel %vm1532_vm14, %v1493_v23, %v699_v43  ;;  %vm715_vm3 = vweird.f32 %v1193_v46 }
 0x22e   :  { %v661_v47 = vsel %vm1521_vm11, %v1191_v25, %v657_v48  ;;  %v668_v59 = vmul.f32 %v1195_v52, %v1506_v33  ;;  %v1542_v62 = vpop.xlane.xlu0 %645  ;;  %v1544_v63 = vpop.xlane.xlu2 %651  ;;  %v708_v15 = vsel %vm1514_vm10, %v707_v45, %v703_v1  ;;  %vm673_vm4 = vweird.f32 %v1195_v52  ;;  %vm716_vm5 = vmor %vm714_vm15, %vm715_vm3 }
 0x22f   :  { %v1197_v0 = vpop.eup %1196  ;;  %v711_v3 = vsub.f32 1.0, %v710_v56  ;;  %1198 = vrcp.f32 %v1542_v62  ;;  %v666_v13 = vsel %vm1525_vm12, %v665_v55, %v661_v47  ;;  %vm674_vm7 = vmor %vm672_vm13, %vm673_vm4  ;;  %v768_v27 = vmul.f32 %v1465_v58, %v708_v15  ;;  %v958_v55 = vld [vmem:[%s1628_s2 + $0x8] sm:$0xff]  ;;  %v957_v56 = vld [vmem:[%s1628_s2] sm:$0xff] }
 0x230   :  { %v669_v7 = vsub.f32 1.0, %v668_v59  ;;  %v738_v12 = vmul.f32 %v1197_v0, %v1502_v29  ;;  %1200 = vrcp.f32 %v1544_v63  ;;  %vm743_vm6 = vweird.f32 %v1197_v0 }
 0x231   :  { %v712_v14 = vmul.f32 %v1193_v46, %v711_v3  ;;  %v765_v24 = vmul.f32 %v1467_v61, %v666_v13  ;;  %vm744_vm10 = vmor %vm742_vm9, %vm743_vm6  ;;  %vm747_vm11 = vcmp.eq.f32.partialorder %v746_v20, 8.507059e+37  ;;  %v749_v33 = vor.u32 1.1754944e-38, %v748_v21  ;;  %1154 = vmatmul.msk.f32.vlgmr.msrb.gmra.mxu3 %vm364_vm1, %v768_v27 }
 0x232   :  { %v670_v16 = vmul.f32 %v1195_v52, %v669_v7  ;;  %v739_v17 = vsub.f32 1.0, %v738_v12  ;;  %v732_v58 = vand.u32 2147483647, %v1542_v62  ;;  %v734_v39 = vand.u32 2147483648, %v1542_v62 }
 0x233   :  { %v713_v18 = vadd.f32 %v1193_v46, %v712_v14  ;;  %1151 = vmatmul.msk.f32.vlgmr.msrb.gmra.mxu0 %vm364_vm1, %v765_v24  ;;  %vm728_vm13 = vweird.f32 %v1542_v62  ;;  %v762_v44 = vand.u32 2147483648, %v1544_v63  ;;  %vm756_vm3 = vweird.f32 %v1544_v63 }
 0x234   :  { %v671_v22 = vadd.f32 %v1195_v52, %v670_v16  ;;  %v740_v23 = vmul.f32 %v1197_v0, %v739_v17  ;;  %982 = vmatpush.msrb.mxu0 %v957_v56 }
 0x235   :  { %v1199_v25 = vpop.eup %1198  ;;  %v717_v26 = vsel %vm716_vm5, %v1193_v46, %v713_v18  ;;  %v763_v50 = vor.u32 1.1754944e-38, %v762_v44 }
 0x236   :  { %v675_v30 = vsel %vm674_vm7, %v1195_v52, %v671_v22  ;;  %v722_v31 = vsel %vm719_vm8, %v721_v19, %v717_v26  ;;  %v741_v32 = vadd.f32 %v1197_v0, %v740_v23  ;;  %v724_v28 = vmul.f32 %v1199_v25, %v1542_v62  ;;  %v1201_v34 = vpop.eup %1200 }
 0x237   :  { %v680_v61 = vsel %vm1551_vm2, %v679_v9, %v675_v30  ;;  %v752_v36 = vmul.f32 %v1201_v34, %v1544_v63  ;;  %v769_v37 = vmul.f32 %v1473_v2, %v722_v31  ;;  %vm729_vm12 = vweird.f32 %v1199_v25 }
 0x238   :  { %v745_v29 = vsel %vm744_vm10, %v1197_v0, %v741_v32  ;;  %v725_v35 = vsub.f32 1.0, %v724_v28  ;;  %v766_v40 = vmul.f32 %v1475_v4, %v680_v61  ;;  %vm757_vm14 = vweird.f32 %v1201_v34  ;;  %vm730_vm15 = vmor %vm728_vm13, %vm729_vm12 }
 0x239   :  { %v750_v38 = vsel %vm747_vm11, %v749_v33, %v745_v29  ;;  %v753_v42 = vsub.f32 1.0, %v752_v36  ;;  %v760_v2 = vand.u32 2147483647, %v1544_v63  ;;  %v735_v4 = vor.u32 1.1754944e-38, %v734_v39  ;;  %vm758_vm4 = vmor %vm756_vm3, %vm757_vm14 }
 0x23a   :  { %v726_v41 = vmul.f32 %v1199_v25, %v725_v35  ;;  %v771_v43 = vmul.f32 %v1477_v5, %v750_v38  ;;  %1152 = vmatmul.msk.f32.vlgmr.msrb.gmra.mxu1 %vm364_vm1, %v766_v40  ;;  %vm733_vm2 = vcmp.eq.f32.partialorder %v732_v58, 8.507059e+37 }
 0x23b   :  { %v754_v46 = vmul.f32 %v1201_v34, %v753_v42  ;;  %1155 = vmatmul.msk.f32.vlgmr.msra.gmra.mxu0 %vm364_vm1, %v769_v37  ;;  %vm761_vm5 = vcmp.eq.f32.partialorder %v760_v2, 8.507059e+37  ;;  %1011 = vmatpush.msrb.mxu1 %v958_v55 }
 0x23c   :  { %v727_v45 = vadd.f32 %v1199_v25, %v726_v41  ;;  %1157 = vmatmul.msk.f32.vlgmr.msra.gmra.mxu2 %vm364_vm1, %v771_v43 }
 0x23d   :  { %v755_v49 = vadd.f32 %v1201_v34, %v754_v46 }
 0x23e   :  { %v731_v48 = vsel %vm730_vm15, %v1199_v25, %v727_v45 }
 0x23f   :  { %v736_v5 = vsel %vm733_vm2, %v735_v4, %v731_v48  ;;  %v759_v52 = vsel %vm758_vm4, %v1201_v34, %v755_v49 }
 0x240   :  { %v770_v51 = vmul.f32 %v1487_v11, %v736_v5  ;;  %v764_v53 = vsel %vm761_vm5, %v763_v50, %v759_v52  ;;  %v959_v11 = vld [vmem:[%s1628_s2 + $0x10] sm:$0xff] }
 0x241   :  { %v772_v54 = vmul.f32 %v1485_v10, %v764_v53  ;;  %1040 = vmatpush.msrb.mxu2 %v959_v11  ;;  %v960_v10 = vld [vmem:[%s1628_s2 + $0x18] sm:$0xff]  ;;  %s1228_s2 = smov [#allocation2]  }
 0x242   :  { %1156 = vmatmul.msk.f32.vlgmr.msra.gmra.mxu1 %vm364_vm1, %v770_v51  ;;  %1069 = vmatpush.msrb.mxu3 %v960_v10  ;;  %s1097_s18 = sshll.u32 %s1228_s2, 4  ;;  %s1098_s18 = int_to_ptr.vmem [resolvable:$true] %s1097_s18 }
 0x243   :  { %1158 = vmatmul.msk.f32.vlgmr.msra.gmra.mxu3 %vm364_vm1, %v772_v54 }
 0x2ad   :  { %v839_v57 = vpop.f32.mrf.mxu2 }
 0x2ae   :  { %1161 = vmatmul.msk.f32.vlgmr.msrb.gmra.mxu1 %vm364_vm1, %v839_v57 }
 0x2b0   :  { %v793_v47 = vpop.f32.mrf.mxu0 }
 0x2b1   :  { %1159 = vmatmul.msk.f32.vlgmr.msrb.gmra.mxu0 %vm364_vm1, %v793_v47 }
 0x2b4   :  { %v862_v60 = vpop.f32.mrf.mxu3 }
 0x2b6   :  { %1162 = vmatmul.msk.f32.gmra.mxu1 %vm364_vm1, %v862_v60 }
 0x2b7   :  { %v816_v59 = vpop.f32.mrf.mxu1 }
 0x2b8   :  { %v885_v62 = vpop.f32.mrf.mxu0 }
 0x2b9   :  { %1160 = vmatmul.msk.f32.gmra.mxu0 %vm364_vm1, %v816_v59  ;;  %1163 = vmatmul.msk.f32.vlgmr.msrb.gmra.mxu2 %vm364_vm1, %v885_v62 }
 0x2bf   :  { %v931_v63 = vpop.f32.mrf.mxu2  ;;  %v908_v0 = vpop.f32.mrf.mxu1 }
 0x2c0   :  { %1165 = vmatmul.msk.f32.vlgmr.msrb.gmra.mxu3 %vm364_vm1, %v931_v63 }
 0x2c1   :  { %1164 = vmatmul.msk.f32.gmra.mxu2 %vm364_vm1, %v908_v0 }
 0x2c6   :  { %v954_v1 = vpop.f32.mrf.mxu3 }
 0x2c8   :  { %1166 = vmatmul.msk.f32.gmra.mxu3 %vm364_vm1, %v954_v1 }
 0x32b   :  { %v1013_v6 = vpop.f32.mrf.mxu1 }
 0x32c   :  { %v1078_v9 = vsel %vm69_vm0, %v1013_v6, 0.0 }
 0x32e   :  { %v984_v3 = vpop.f32.mrf.mxu0 }
 0x32f   :  { %v1077_v7 = vsel %vm69_vm0, %v984_v3, 0.0 }
 0x330   :  { %v1079_v13 = vadd.f32 %v1078_v9, %v1077_v7 }
 0x333   :  { %v1016_v18 = vpop.f32.mrf.mxu1 }
 0x334   :  { %v1085_v22 = vsel %vm69_vm0, %v1016_v18, 0.0 }
 0x336   :  { %v987_v14 = vpop.f32.mrf.mxu0 }
 0x337   :  { %v1084_v20 = vsel %vm69_vm0, %v987_v14, 0.0 }
 0x338   :  { %v1086_v24 = vadd.f32 %v1085_v22, %v1084_v20 }
 0x33c   :  { %v1042_v8 = vpop.f32.mrf.mxu2 }
 0x33d   :  { %v1080_v12 = vsel %vm69_vm0, %v1042_v8, 0.0 }
 0x33e   :  { %v1081_v15 = vadd.f32 %v1080_v12, %v1079_v13 }
 0x343   :  { %v1071_v16 = vpop.f32.mrf.mxu3 }
 0x344   :  { %v1082_v17 = vsel %vm69_vm0, %v1071_v16, 0.0  ;;  %v1045_v21 = vpop.f32.mrf.mxu2 }
 0x345   :  { %v1083_v19 = vadd.f32 %v1082_v17, %v1081_v15  ;;  %v1087_v23 = vsel %vm69_vm0, %v1045_v21, 0.0 }
 0x346   :  { %v1088_v25 = vadd.f32 %v1087_v23, %v1086_v24 }
 0x347   :  { %1091 = vst.msk [vmem:[#allocation2] sm:$0xff] %vm69_vm0, %v1083_v19 }
 0x34b   :  { %v1074_v26 = vpop.f32.mrf.mxu3 }
 0x34c   :  { %v1089_v27 = vsel %vm69_vm0, %v1074_v26, 0.0 }
 0x34d   :  { %v1090_v30 = vadd.f32 %v1089_v27, %v1088_v25 }
 0x34f   :  { %1092 = vst.msk [vmem:[#allocation2 + $0x8] sm:$0xff] %vm69_vm0, %v1090_v30 }
 0x350   :  { %1105 = dma.vmem_to_hbm [thread:$0]  %s1098_s18, 256, %s1100_s21, [#allocation3], %s1229_s22, %s1229_s22, %s1230_s23  }
 0x351   :  { %1226 = dma.done.wait [#allocation3], 256  }
 0x352   :  { %1227 = vsyncadd [#allocation3], 4294967040 }
 0x353   :  { %1110 = vsyncpa [#allocation3], 1 }

</bundles_post_ra>
